<compile_context>
chip_gen: v6e
topology: v6e:2x2x1
jax: 0.10.0
libtpu: 0.0.40
codegen_flags: <defaults>
</compile_context>

<pallas_src>
import functools
import math

import jax
import jax.numpy as jnp
from jax.experimental import pallas as pl
from jax.experimental.pallas import tpu as pltpu

_LANE = 128      # lane width  (last dim)
_SUBLANE = 8     # sublane     (second-to-last dim, f32)


def _round_up(x, m):
    return ((x + m - 1) // m) * m


# ---------------------------------------------------------------------------
# Fused MLP kernel
#   h = relu(x @ W_in + b_in)
#   for l in hidden: h = relu(h @ W_hid[l] + b_hid[l])
#   out = h @ W_out + b_out
# ---------------------------------------------------------------------------
def _fused_mlp_kernel(x_ref, w_in_ref, b_in_ref, w_hid_ref, b_hid_ref,
                      w_out_ref, b_out_ref, o_ref, *, num_hidden):
    cdt = w_in_ref.dtype                           # compute dtype (f32 or bf16)
    h = x_ref[...].astype(cdt)

    # fc1 + ReLU (MXU matmul, f32 accumulation; f32 bias/ReLU epilogue)
    y = jnp.dot(h, w_in_ref[...], preferred_element_type=jnp.float32)
    h = jnp.maximum(y + b_in_ref[...], 0.0).astype(cdt)   # keep h in compute dtype

    # hidden layers + ReLU (static unroll; weights stay VMEM-resident)
    for l in range(num_hidden):
        y = jnp.dot(h, w_hid_ref[l], preferred_element_type=jnp.float32)
        h = jnp.maximum(y + b_hid_ref[l], 0.0).astype(cdt)

    # fc2 (no ReLU)
    y = jnp.dot(h, w_out_ref[...], preferred_element_type=jnp.float32)
    o_ref[...] = (y + b_out_ref[...]).astype(o_ref.dtype)


# ---------------------------------------------------------------------------
# pallas_call wrapper
# ---------------------------------------------------------------------------
def _fused_mlp_call(x_pad, packed, *, tm, single_buffer_weights=True):
    B_pad, Din = x_pad.shape
    w_in, b_in = packed["w_in"], packed["b_in"]
    w_hid, b_hid = packed["w_hid"], packed["b_hid"]
    w_out, b_out = packed["w_out"], packed["b_out"]
    H = packed["num_hidden"]
    Hs = w_hid.shape[0]                            # max(H, 1): dummy row when H == 0
    D = w_in.shape[1]
    Dout = w_out.shape[1]
    assert B_pad % tm == 0
    assert Din % _LANE == 0 and D % _LANE == 0 and Dout % _LANE == 0

    w_isz = w_in.dtype.itemsize
    x_isz = x_pad.dtype.itemsize

    # Advisory cost for XLA's scheduler (real, un-inflated dims).
    cost = pl.CostEstimate(
        flops=2 * B_pad * (Din * D + H * D * D + D * Dout),
        transcendentals=0,
        bytes_accessed=int(x_pad.size * x_isz
                           + (w_in.size + w_hid.size + w_out.size) * w_isz
                           + (b_in.size + b_hid.size + b_out.size) * 4
                           + B_pad * Dout * 4),
    )

    # Explicit VMEM budget: resident weights (x n_buffers) + double-buffered
    # activation tiles + headroom for the intermediate h / f32 accumulators.
    weight_bytes = ((w_in.size + w_hid.size + w_out.size) * w_isz
                    + (b_in.size + b_hid.size + b_out.size) * 4)
    n_wbuf = 1 if single_buffer_weights else 2
    act_bytes = 2 * tm * Din * x_isz + 2 * tm * Dout * 4
    inter_bytes = 2 * tm * D * 4
    need = n_wbuf * weight_bytes + act_bytes + inter_bytes
    vmem_limit = int(min(max(need + (4 << 20), 16 << 20), 128 << 20))

    kernel = functools.partial(_fused_mlp_kernel, num_hidden=H)

    def build_and_run(single_buf):
        # Single-buffer the never-changing weight/bias blocks so they are not
        # double-buffered in VMEM (critical on v7x's 64 MiB/TC, v5e's 16 MiB default).
        w_kw = {"pipeline_mode": pl.Buffered(1)} if single_buf else {}
        grid_spec = pltpu.PrefetchScalarGridSpec(
            num_scalar_prefetch=0,
            grid=(B_pad // tm,),                                  # stream batch tiles
            in_specs=[
                pl.BlockSpec((tm, Din), lambda i: (i, 0)),              # x: tiled
                pl.BlockSpec((Din, D), lambda i: (0, 0), **w_kw),       # fc1 W (resident)
                pl.BlockSpec((1, D), lambda i: (0, 0), **w_kw),         # fc1 b
                pl.BlockSpec((Hs, D, D), lambda i: (0, 0, 0), **w_kw),  # hidden W stack
                pl.BlockSpec((Hs, 1, D), lambda i: (0, 0, 0), **w_kw),  # hidden b stack
                pl.BlockSpec((D, Dout), lambda i: (0, 0), **w_kw),      # fc2 W
                pl.BlockSpec((1, Dout), lambda i: (0, 0), **w_kw),      # fc2 b
            ],
            out_specs=pl.BlockSpec((tm, Dout), lambda i: (i, 0)),       # lane-dense out
        )
        return pl.pallas_call(
            kernel,
            out_shape=jax.ShapeDtypeStruct((B_pad, Dout), jnp.float32),
            grid_spec=grid_spec,
            compiler_params=pltpu.CompilerParams(
                dimension_semantics=("parallel",),   # shard batch tiles across TCs (v7x)
                vmem_limit_bytes=vmem_limit,
            ),
            cost_estimate=cost,
        )(x_pad, w_in, b_in, w_hid, b_hid, w_out, b_out)

    if not single_buffer_weights:
        return build_and_run(False)
    try:
        return build_and_run(True)
    except Exception:
        # pl.Buffered(1) (single buffering) not supported by this jax/Mosaic
        # version -> fall back to the default double-buffered weight blocks.
        return build_and_run(False)


# ---------------------------------------------------------------------------
# Batch tiling: tm multiple of the sublane packing, B padded UP to multiple of tm
# ---------------------------------------------------------------------------
def _choose_batch_tiling(batch, tm_cap=256, multiple=_SUBLANE):
    tm_cap = _round_up(max(tm_cap, multiple), multiple)
    b_pad = _round_up(max(batch, 1), multiple)
    if b_pad <= tm_cap:
        tm = b_pad
    else:
        n_tiles = pl.cdiv(b_pad, tm_cap)
        if n_tiles % 2:                      # even tile count -> both v7x TCs busy
            n_tiles += 1
        tm = _round_up(pl.cdiv(b_pad, n_tiles), multiple)
    return tm, _round_up(b_pad, tm)


# ---------------------------------------------------------------------------
# Parameter init / packing
# ---------------------------------------------------------------------------
def init_simplenet_params(key, inp_dim, out_dim, width, num_layers):
    """Unpadded params, PyTorch nn.Linear-style uniform init.
    Weights stored (in, out) so y = x @ W + b matches F.linear with W = W_pt.T."""
    params = []
    dims = [(inp_dim, width)] + [(width, width)] * (num_layers - 1) + [(width, out_dim)]
    for (din, dout) in dims:
        key, kw, kb = jax.random.split(key, 3)
        bound = 1.0 / math.sqrt(din)
        w = jax.random.uniform(kw, (din, dout), jnp.float32, -bound, bound)
        b = jax.random.uniform(kb, (dout,), jnp.float32, -bound, bound)
        params.append((w, b))
    return params


def pack_simplenet_params(params, compute_dtype=jnp.float32):
    """Pad/stack SimpleNet params for the fused kernel.

    params[0] = fc1, params[1:-1] = hidden layers, params[-1] = fc2.  Weights are
    zero-padded to lane-dense dims (zero rows/cols + zero bias keep padded lanes
    exactly 0 through the matmul/ReLU chain).  Biases always stay f32."""
    assert len(params) >= 2
    w1, b1 = params[0]
    w2, b2 = params[-1]
    hidden = params[1:-1]
    inp_dim, width = w1.shape
    assert w2.shape[0] == width
    out_dim = w2.shape[1]

    D = _round_up(width, _LANE)
    Din = _round_up(inp_dim, _LANE)
    Dout = _round_up(out_dim, _LANE)
    H = len(hidden)
    Hs = max(H, 1)                     # keep a dummy (1,D,D) block so specs stay static

    w_in = jnp.zeros((Din, D), compute_dtype).at[:inp_dim, :width].set(
        w1.astype(compute_dtype))
    b_in = jnp.zeros((1, D), jnp.float32).at[0, :width].set(b1)
    w_out = jnp.zeros((D, Dout), compute_dtype).at[:width, :out_dim].set(
        w2.astype(compute_dtype))
    b_out = jnp.zeros((1, Dout), jnp.float32).at[0, :out_dim].set(b2)

    w_hid = jnp.zeros((Hs, D, D), compute_dtype)
    b_hid = jnp.zeros((Hs, 1, D), jnp.float32)
    for l, (w, b) in enumerate(hidden):
        w_hid = w_hid.at[l, :width, :width].set(w.astype(compute_dtype))
        b_hid = b_hid.at[l, 0, :width].set(b)

    return {
        "w_in": w_in, "b_in": b_in,
        "w_hid": w_hid, "b_hid": b_hid,
        "w_out": w_out, "b_out": b_out,
        "num_hidden": H,
        "dims": (inp_dim, width, out_dim),
    }


def simplenet_forward(x, packed, *, tm_cap=256, single_buffer_weights=True):
    """x: (batch, inp_dim) f32 -> (batch, out_dim) f32, whole MLP in one kernel."""
    batch, inp_dim = x.shape
    real_inp, _, out_dim = packed["dims"]
    assert inp_dim == real_inp
    Din = packed["w_in"].shape[0]
    cdt = packed["w_in"].dtype
    # Sublane packing: 8 rows for f32 tiles, 16 for bf16 (2 rows / sublane).
    multiple = _SUBLANE * max(1, 4 // jnp.dtype(cdt).itemsize)
    tm, B_pad = _choose_batch_tiling(batch, tm_cap=tm_cap, multiple=multiple)
    x_pad = jnp.zeros((B_pad, Din), cdt).at[:batch, :inp_dim].set(x.astype(cdt))
    out_pad = _fused_mlp_call(x_pad, packed, tm=tm,
                              single_buffer_weights=single_buffer_weights)
    return out_pad[:batch, :out_dim]


# ---------------------------------------------------------------------------
if __name__ == "__main__":
    # Small shapes consistent with SimpleNet: batch=8, inp_dim=16, width=32,
    # out_dim=8, num_layers=3  (=> fc1 + 2 hidden linears + fc2).
    key = jax.random.PRNGKey(0)
    key, kx = jax.random.split(key)
    batch, inp_dim, out_dim, width, num_layers = 8, 16, 8, 32, 3

    x = jax.random.normal(kx, (batch, inp_dim), jnp.float32)
    params = init_simplenet_params(key, inp_dim, out_dim, width, num_layers)

    # Pure-JAX reference on the unpadded params.
    ref = x
    for (w, b) in params[:-1]:
        ref = jnp.maximum(ref @ w + b, 0.0)
    ref = ref @ params[-1][0] + params[-1][1]

    # f32 compute path: exact vs reference at 1e-5.
    packed_f32 = pack_simplenet_params(params, compute_dtype=jnp.float32)
    out_f32 = simplenet_forward(x, packed_f32)
    jax.block_until_ready(out_f32)
    assert out_f32.shape == (batch, out_dim)
    assert jnp.allclose(out_f32, ref, atol=1e-5, rtol=1e-5)

    # bf16 compute path (MXU-native weights/activations, f32 accumulation and
    # f32 bias/ReLU epilogue): loosened tolerance as expected for bf16.
    packed_bf16 = pack_simplenet_params(params, compute_dtype=jnp.bfloat16)
    out_bf16 = simplenet_forward(x, packed_bf16)
    jax.block_until_ready(out_bf16)
    assert out_bf16.shape == (batch, out_dim)
    assert jnp.allclose(out_bf16, ref, atol=5e-2, rtol=5e-2)

    print("KERNEL_OK")
</pallas_src>

<mosaic_0001>
module attributes {stable_mosaic.version = 11 : i64} {
  func.func @_fused_mlp_kernel(%arg0: i32, %arg1: memref<8x128xf32, #tpu.memory_space<vmem>>, %arg2: memref<128x128xf32, #tpu.memory_space<vmem>>, %arg3: memref<1x128xf32, #tpu.memory_space<vmem>>, %arg4: memref<2x128x128xf32, #tpu.memory_space<vmem>>, %arg5: memref<2x1x128xf32, #tpu.memory_space<vmem>>, %arg6: memref<128x128xf32, #tpu.memory_space<vmem>>, %arg7: memref<1x128xf32, #tpu.memory_space<vmem>>, %arg8: memref<8x128xf32, #tpu.memory_space<vmem>>) attributes {dimension_semantics = [#tpu.dimension_semantics<parallel>], iteration_bounds = array<i64: 1>, scalar_prefetch = 0 : i64, scratch_operands = 0 : i64, tpu.core_type = #tpu.core_type<tc>, window_params = [{transform_indices = @transform_0, window_bounds = array<i64: 8, 128>}, {pipeline_mode = #tpu.pipeline_mode<synchronous>, transform_indices = @transform_1, window_bounds = array<i64: 128, 128>}, {pipeline_mode = #tpu.pipeline_mode<synchronous>, transform_indices = @transform_2, window_bounds = array<i64: 1, 128>}, {pipeline_mode = #tpu.pipeline_mode<synchronous>, transform_indices = @transform_3, window_bounds = array<i64: 2, 128, 128>}, {pipeline_mode = #tpu.pipeline_mode<synchronous>, transform_indices = @transform_4, window_bounds = array<i64: 2, 1, 128>}, {pipeline_mode = #tpu.pipeline_mode<synchronous>, transform_indices = @transform_5, window_bounds = array<i64: 128, 128>}, {pipeline_mode = #tpu.pipeline_mode<synchronous>, transform_indices = @transform_6, window_bounds = array<i64: 1, 128>}, {transform_indices = @transform_7, window_bounds = array<i64: 8, 128>}]} {
    %c0 = arith.constant 0 : index
    %c0_0 = arith.constant 0 : index
    %0 = vector.load %arg1[%c0, %c0_0] : memref<8x128xf32, #tpu.memory_space<vmem>>, vector<8x128xf32>
    %c0_1 = arith.constant 0 : index
    %c0_2 = arith.constant 0 : index
    %1 = vector.load %arg2[%c0_1, %c0_2] : memref<128x128xf32, #tpu.memory_space<vmem>>, vector<128x128xf32>
    %cst = arith.constant dense<0.000000e+00> : vector<8x128xf32>
    %2 = tpu.matmul %0, %1, %cst {dimension_numbers = #tpu.dot_dimension_numbers<[1], [0], [0], [1], [0, 0, 1, 1], [], []>} : vector<8x128xf32>, vector<128x128xf32>, vector<8x128xf32> -> vector<8x128xf32>
    %c0_3 = arith.constant 0 : index
    %c0_4 = arith.constant 0 : index
    %3 = vector.load %arg3[%c0_3, %c0_4] : memref<1x128xf32, #tpu.memory_space<vmem>>, vector<1x128xf32>
    %4 = vector.broadcast %3 : vector<1x128xf32> to vector<8x128xf32>
    %5 = arith.addf %2, %4 : vector<8x128xf32>
    %cst_5 = arith.constant 0.000000e+00 : f32
    %6 = vector.broadcast %cst_5 : f32 to vector<8x128xf32>
    %7 = arith.maximumf %5, %6 : vector<8x128xf32>
    %c0_6 = arith.constant 0 : index
    %c0_7 = arith.constant 0 : index
    %c0_8 = arith.constant 0 : index
    %8 = vector.load %arg4[%c0_6, %c0_7, %c0_8] : memref<2x128x128xf32, #tpu.memory_space<vmem>>, vector<1x128x128xf32>
    %9 = vector.shape_cast %8 : vector<1x128x128xf32> to vector<128x128xf32>
    %cst_9 = arith.constant dense<0.000000e+00> : vector<8x128xf32>
    %10 = tpu.matmul %7, %9, %cst_9 {dimension_numbers = #tpu.dot_dimension_numbers<[1], [0], [0], [1], [0, 0, 1, 1], [], []>} : vector<8x128xf32>, vector<128x128xf32>, vector<8x128xf32> -> vector<8x128xf32>
    %c0_10 = arith.constant 0 : index
    %c0_11 = arith.constant 0 : index
    %c0_12 = arith.constant 0 : index
    %11 = vector.load %arg5[%c0_10, %c0_11, %c0_12] : memref<2x1x128xf32, #tpu.memory_space<vmem>>, vector<1x1x128xf32>
    %12 = vector.shape_cast %11 : vector<1x1x128xf32> to vector<1x128xf32>
    %13 = vector.broadcast %12 : vector<1x128xf32> to vector<8x128xf32>
    %14 = arith.addf %10, %13 : vector<8x128xf32>
    %cst_13 = arith.constant 0.000000e+00 : f32
    %15 = vector.broadcast %cst_13 : f32 to vector<8x128xf32>
    %16 = arith.maximumf %14, %15 : vector<8x128xf32>
    %c1 = arith.constant 1 : index
    %c0_14 = arith.constant 0 : index
    %c0_15 = arith.constant 0 : index
    %17 = vector.load %arg4[%c1, %c0_14, %c0_15] : memref<2x128x128xf32, #tpu.memory_space<vmem>>, vector<1x128x128xf32>
    %18 = vector.shape_cast %17 : vector<1x128x128xf32> to vector<128x128xf32>
    %cst_16 = arith.constant dense<0.000000e+00> : vector<8x128xf32>
    %19 = tpu.matmul %16, %18, %cst_16 {dimension_numbers = #tpu.dot_dimension_numbers<[1], [0], [0], [1], [0, 0, 1, 1], [], []>} : vector<8x128xf32>, vector<128x128xf32>, vector<8x128xf32> -> vector<8x128xf32>
    %c1_17 = arith.constant 1 : index
    %c0_18 = arith.constant 0 : index
    %c0_19 = arith.constant 0 : index
    %20 = vector.load %arg5[%c1_17, %c0_18, %c0_19] : memref<2x1x128xf32, #tpu.memory_space<vmem>>, vector<1x1x128xf32>
    %21 = vector.shape_cast %20 : vector<1x1x128xf32> to vector<1x128xf32>
    %22 = vector.broadcast %21 : vector<1x128xf32> to vector<8x128xf32>
    %23 = arith.addf %19, %22 : vector<8x128xf32>
    %cst_20 = arith.constant 0.000000e+00 : f32
    %24 = vector.broadcast %cst_20 : f32 to vector<8x128xf32>
    %25 = arith.maximumf %23, %24 : vector<8x128xf32>
    %c0_21 = arith.constant 0 : index
    %c0_22 = arith.constant 0 : index
    %26 = vector.load %arg6[%c0_21, %c0_22] : memref<128x128xf32, #tpu.memory_space<vmem>>, vector<128x128xf32>
    %cst_23 = arith.constant dense<0.000000e+00> : vector<8x128xf32>
    %27 = tpu.matmul %25, %26, %cst_23 {dimension_numbers = #tpu.dot_dimension_numbers<[1], [0], [0], [1], [0, 0, 1, 1], [], []>} : vector<8x128xf32>, vector<128x128xf32>, vector<8x128xf32> -> vector<8x128xf32>
    %c0_24 = arith.constant 0 : index
    %c0_25 = arith.constant 0 : index
    %28 = vector.load %arg7[%c0_24, %c0_25] : memref<1x128xf32, #tpu.memory_space<vmem>>, vector<1x128xf32>
    %29 = vector.broadcast %28 : vector<1x128xf32> to vector<8x128xf32>
    %30 = arith.addf %27, %29 : vector<8x128xf32>
    %c0_26 = arith.constant 0 : index
    %c0_27 = arith.constant 0 : index
    %31 = vector.load %arg8[%c0_26, %c0_27] : memref<8x128xf32, #tpu.memory_space<vmem>>, vector<8x128xf32>
    tpu.vector_store %arg8[%c0_26, %c0_27], %30 {strides = array<i32>} : memref<8x128xf32, #tpu.memory_space<vmem>>, vector<8x128xf32>,
    return
  }
  func.func @transform_0(%arg0: i32) -> (i32, i32) {
    %c0_i32 = arith.constant 0 : i32
    %c0_i32_0 = arith.constant 0 : i32
    return %arg0, %c0_i32 : i32, i32
  }
  func.func @transform_1(%arg0: i32) -> (i32, i32) {
    %c0_i32 = arith.constant 0 : i32
    %c0_i32_0 = arith.constant 0 : i32
    %c0_i32_1 = arith.constant 0 : i32
    return %c0_i32, %c0_i32_0 : i32, i32
  }
  func.func @transform_2(%arg0: i32) -> (i32, i32) {
    %c0_i32 = arith.constant 0 : i32
    %c0_i32_0 = arith.constant 0 : i32
    %c0_i32_1 = arith.constant 0 : i32
    return %c0_i32, %c0_i32_0 : i32, i32
  }
  func.func @transform_3(%arg0: i32) -> (i32, i32, i32) {
    %c0_i32 = arith.constant 0 : i32
    %c0_i32_0 = arith.constant 0 : i32
    %c0_i32_1 = arith.constant 0 : i32
    %c0_i32_2 = arith.constant 0 : i32
    return %c0_i32, %c0_i32_0, %c0_i32_1 : i32, i32, i32
  }
  func.func @transform_4(%arg0: i32) -> (i32, i32, i32) {
    %c0_i32 = arith.constant 0 : i32
    %c0_i32_0 = arith.constant 0 : i32
    %c0_i32_1 = arith.constant 0 : i32
    %c0_i32_2 = arith.constant 0 : i32
    return %c0_i32, %c0_i32_0, %c0_i32_1 : i32, i32, i32
  }
  func.func @transform_5(%arg0: i32) -> (i32, i32) {
    %c0_i32 = arith.constant 0 : i32
    %c0_i32_0 = arith.constant 0 : i32
    %c0_i32_1 = arith.constant 0 : i32
    return %c0_i32, %c0_i32_0 : i32, i32
  }
  func.func @transform_6(%arg0: i32) -> (i32, i32) {
    %c0_i32 = arith.constant 0 : i32
    %c0_i32_0 = arith.constant 0 : i32
    %c0_i32_1 = arith.constant 0 : i32
    return %c0_i32, %c0_i32_0 : i32, i32
  }
  func.func @transform_7(%arg0: i32) -> (i32, i32) {
    %c0_i32 = arith.constant 0 : i32
    %c0_i32_0 = arith.constant 0 : i32
    return %arg0, %c0_i32 : i32, i32
  }
}

module attributes {stable_mosaic.version = 11 : i64} {
  func.func @_fused_mlp_kernel(%arg0: i32, %arg1: memref<8x128xf32, #tpu.memory_space<vmem>>, %arg2: memref<128x128xf32, #tpu.memory_space<vmem>>, %arg3: memref<1x128xf32, #tpu.memory_space<vmem>>, %arg4: memref<2x128x128xf32, #tpu.memory_space<vmem>>, %arg5: memref<2x1x128xf32, #tpu.memory_space<vmem>>, %arg6: memref<128x128xf32, #tpu.memory_space<vmem>>, %arg7: memref<1x128xf32, #tpu.memory_space<vmem>>, %arg8: memref<8x128xf32, #tpu.memory_space<vmem>>) attributes {dimension_semantics = [#tpu.dimension_semantics<parallel>], iteration_bounds = array<i64: 1>, scalar_prefetch = 0 : i64, scratch_operands = 0 : i64, tpu.core_type = #tpu.core_type<tc>, window_params = [{transform_indices = @transform_0, window_bounds = array<i64: 8, 128>}, {pipeline_mode = #tpu.pipeline_mode<synchronous>, transform_indices = @transform_1, window_bounds = array<i64: 128, 128>}, {pipeline_mode = #tpu.pipeline_mode<synchronous>, transform_indices = @transform_2, window_bounds = array<i64: 1, 128>}, {pipeline_mode = #tpu.pipeline_mode<synchronous>, transform_indices = @transform_3, window_bounds = array<i64: 2, 128, 128>}, {pipeline_mode = #tpu.pipeline_mode<synchronous>, transform_indices = @transform_4, window_bounds = array<i64: 2, 1, 128>}, {pipeline_mode = #tpu.pipeline_mode<synchronous>, transform_indices = @transform_5, window_bounds = array<i64: 128, 128>}, {pipeline_mode = #tpu.pipeline_mode<synchronous>, transform_indices = @transform_6, window_bounds = array<i64: 1, 128>}, {transform_indices = @transform_7, window_bounds = array<i64: 8, 128>}]} {
    %c0 = arith.constant 0 : index
    %c0_0 = arith.constant 0 : index
    %0 = vector.load %arg1[%c0, %c0_0] : memref<8x128xf32, #tpu.memory_space<vmem>>, vector<8x128xf32>
    %c0_1 = arith.constant 0 : index
    %c0_2 = arith.constant 0 : index
    %1 = vector.load %arg2[%c0_1, %c0_2] : memref<128x128xf32, #tpu.memory_space<vmem>>, vector<128x128xf32>
    %cst = arith.constant dense<0.000000e+00> : vector<8x128xf32>
    %2 = tpu.matmul %0, %1, %cst {dimension_numbers = #tpu.dot_dimension_numbers<[1], [0], [0], [1], [0, 0, 1, 1], [], []>} : vector<8x128xf32>, vector<128x128xf32>, vector<8x128xf32> -> vector<8x128xf32>
    %c0_3 = arith.constant 0 : index
    %c0_4 = arith.constant 0 : index
    %3 = vector.load %arg3[%c0_3, %c0_4] : memref<1x128xf32, #tpu.memory_space<vmem>>, vector<1x128xf32>
    %4 = vector.broadcast %3 : vector<1x128xf32> to vector<8x128xf32>
    %5 = arith.addf %2, %4 : vector<8x128xf32>
    %cst_5 = arith.constant 0.000000e+00 : f32
    %6 = vector.broadcast %cst_5 : f32 to vector<8x128xf32>
    %7 = arith.maximumf %5, %6 : vector<8x128xf32>
    %c0_6 = arith.constant 0 : index
    %c0_7 = arith.constant 0 : index
    %c0_8 = arith.constant 0 : index
    %8 = vector.load %arg4[%c0_6, %c0_7, %c0_8] : memref<2x128x128xf32, #tpu.memory_space<vmem>>, vector<1x128x128xf32>
    %9 = vector.shape_cast %8 : vector<1x128x128xf32> to vector<128x128xf32>
    %cst_9 = arith.constant dense<0.000000e+00> : vector<8x128xf32>
    %10 = tpu.matmul %7, %9, %cst_9 {dimension_numbers = #tpu.dot_dimension_numbers<[1], [0], [0], [1], [0, 0, 1, 1], [], []>} : vector<8x128xf32>, vector<128x128xf32>, vector<8x128xf32> -> vector<8x128xf32>
    %c0_10 = arith.constant 0 : index
    %c0_11 = arith.constant 0 : index
    %c0_12 = arith.constant 0 : index
    %11 = vector.load %arg5[%c0_10, %c0_11, %c0_12] : memref<2x1x128xf32, #tpu.memory_space<vmem>>, vector<1x1x128xf32>
    %12 = vector.shape_cast %11 : vector<1x1x128xf32> to vector<1x128xf32>
    %13 = vector.broadcast %12 : vector<1x128xf32> to vector<8x128xf32>
    %14 = arith.addf %10, %13 : vector<8x128xf32>
    %cst_13 = arith.constant 0.000000e+00 : f32
    %15 = vector.broadcast %cst_13 : f32 to vector<8x128xf32>
    %16 = arith.maximumf %14, %15 : vector<8x128xf32>
    %c1 = arith.constant 1 : index
    %c0_14 = arith.constant 0 : index
    %c0_15 = arith.constant 0 : index
    %17 = vector.load %arg4[%c1, %c0_14, %c0_15] : memref<2x128x128xf32, #tpu.memory_space<vmem>>, vector<1x128x128xf32>
    %18 = vector.shape_cast %17 : vector<1x128x128xf32> to vector<128x128xf32>
    %cst_16 = arith.constant dense<0.000000e+00> : vector<8x128xf32>
    %19 = tpu.matmul %16, %18, %cst_16 {dimension_numbers = #tpu.dot_dimension_numbers<[1], [0], [0], [1], [0, 0, 1, 1], [], []>} : vector<8x128xf32>, vector<128x128xf32>, vector<8x128xf32> -> vector<8x128xf32>
    %c1_17 = arith.constant 1 : index
    %c0_18 = arith.constant 0 : index
    %c0_19 = arith.constant 0 : index
    %20 = vector.load %arg5[%c1_17, %c0_18, %c0_19] : memref<2x1x128xf32, #tpu.memory_space<vmem>>, vector<1x1x128xf32>
    %21 = vector.shape_cast %20 : vector<1x1x128xf32> to vector<1x128xf32>
    %22 = vector.broadcast %21 : vector<1x128xf32> to vector<8x128xf32>
    %23 = arith.addf %19, %22 : vector<8x128xf32>
    %cst_20 = arith.constant 0.000000e+00 : f32
    %24 = vector.broadcast %cst_20 : f32 to vector<8x128xf32>
    %25 = arith.maximumf %23, %24 : vector<8x128xf32>
    %c0_21 = arith.constant 0 : index
    %c0_22 = arith.constant 0 : index
    %26 = vector.load %arg6[%c0_21, %c0_22] : memref<128x128xf32, #tpu.memory_space<vmem>>, vector<128x128xf32>
    %cst_23 = arith.constant dense<0.000000e+00> : vector<8x128xf32>
    %27 = tpu.matmul %25, %26, %cst_23 {dimension_numbers = #tpu.dot_dimension_numbers<[1], [0], [0], [1], [0, 0, 1, 1], [], []>} : vector<8x128xf32>, vector<128x128xf32>, vector<8x128xf32> -> vector<8x128xf32>
    %c0_24 = arith.constant 0 : index
    %c0_25 = arith.constant 0 : index
    %28 = vector.load %arg7[%c0_24, %c0_25] : memref<1x128xf32, #tpu.memory_space<vmem>>, vector<1x128xf32>
    %29 = vector.broadcast %28 : vector<1x128xf32> to vector<8x128xf32>
    %30 = arith.addf %27, %29 : vector<8x128xf32>
    %c0_26 = arith.constant 0 : index
    %c0_27 = arith.constant 0 : index
    %31 = vector.load %arg8[%c0_26, %c0_27] : memref<8x128xf32, #tpu.memory_space<vmem>>, vector<8x128xf32>
    tpu.vector_store %arg8[%c0_26, %c0_27], %30 {strides = array<i32>} : memref<8x128xf32, #tpu.memory_space<vmem>>, vector<8x128xf32>,
    return
  }
  func.func @transform_0(%arg0: i32) -> (i32, i32) {
    %c0_i32 = arith.constant 0 : i32
    %c0_i32_0 = arith.constant 0 : i32
    return %arg0, %c0_i32 : i32, i32
  }
  func.func @transform_1(%arg0: i32) -> (i32, i32) {
    %c0_i32 = arith.constant 0 : i32
    %c0_i32_0 = arith.constant 0 : i32
    %c0_i32_1 = arith.constant 0 : i32
    return %c0_i32, %c0_i32_0 : i32, i32
  }
  func.func @transform_2(%arg0: i32) -> (i32, i32) {
    %c0_i32 = arith.constant 0 : i32
    %c0_i32_0 = arith.constant 0 : i32
    %c0_i32_1 = arith.constant 0 : i32
    return %c0_i32, %c0_i32_0 : i32, i32
  }
  func.func @transform_3(%arg0: i32) -> (i32, i32, i32) {
    %c0_i32 = arith.constant 0 : i32
    %c0_i32_0 = arith.constant 0 : i32
    %c0_i32_1 = arith.constant 0 : i32
    %c0_i32_2 = arith.constant 0 : i32
    return %c0_i32, %c0_i32_0, %c0_i32_1 : i32, i32, i32
  }
  func.func @transform_4(%arg0: i32) -> (i32, i32, i32) {
    %c0_i32 = arith.constant 0 : i32
    %c0_i32_0 = arith.constant 0 : i32
    %c0_i32_1 = arith.constant 0 : i32
    %c0_i32_2 = arith.constant 0 : i32
    return %c0_i32, %c0_i32_0, %c0_i32_1 : i32, i32, i32
  }
  func.func @transform_5(%arg0: i32) -> (i32, i32) {
    %c0_i32 = arith.constant 0 : i32
    %c0_i32_0 = arith.constant 0 : i32
    %c0_i32_1 = arith.constant 0 : i32
    return %c0_i32, %c0_i32_0 : i32, i32
  }
  func.func @transform_6(%arg0: i32) -> (i32, i32) {
    %c0_i32 = arith.constant 0 : i32
    %c0_i32_0 = arith.constant 0 : i32
    %c0_i32_1 = arith.constant 0 : i32
    return %c0_i32, %c0_i32_0 : i32, i32
  }
  func.func @transform_7(%arg0: i32) -> (i32, i32) {
    %c0_i32 = arith.constant 0 : i32
    %c0_i32_0 = arith.constant 0 : i32
    return %arg0, %c0_i32 : i32, i32
  }
}

</mosaic_0001>

<bundles_post_ra>
// kernel: tpu_custom_call.1
= control target key start
LH: loop header
LB: loop body
LE: loop exit
PB: predicated region body
PF: predicated region fallthrough
CT: control target
= control target key end

     0   :  { %12 = vsyncpa [#allocation3], 0  ;;  %s963_s0 = inlined_call_operand.hbm [shape: f32[8,128], index: 0, kind: input, shape index: {}]   ;;  %s964_s1 = inlined_call_operand.hbm [shape: f32[128,128], index: 1, kind: input, shape index: {}]   ;;  %s965_s2 = inlined_call_operand.vmem [shape: f32[1,128], index: 2, kind: input, shape index: {}]   ;;  %s966_s3 = inlined_call_operand.hbm [shape: f32[2,128,128], index: 3, kind: input, shape index: {}]   ;;  %s967_s4 = inlined_call_operand.vmem [shape: f32[2,1,128], index: 4, kind: input, shape index: {}]   ;;  %s968_s5 = inlined_call_operand.hbm [shape: f32[128,128], index: 5, kind: input, shape index: {}]   ;;  %s969_s6 = inlined_call_operand.vmem [shape: f32[1,128], index: 6, kind: input, shape index: {}]   ;;  %s970_s7 = inlined_call_operand.hbm [shape: f32[8,128], index: 7, kind: output, shape index: {}]  }
   0x1   :  { %13 = vsyncpa [#allocation6], 0 }
   0x2   :  { %14 = vsyncpa [#allocation9], 0 }
   0x3   :  { %15 = vsyncpa [#allocation4], 0  ;;  %s806_s24 = smov [#allocation5]  }
   0x4   :  { %s31_s25 = sshll.u32 %s806_s24, 4  ;;  %s32_s25 = int_to_ptr.vmem [resolvable:$true] %s31_s25 }
   0x5   :  { %s706_s26 = scalar_lea.vmem %s32_s25, 2048  ;;  %p711_p1 = scmp.lt.s32.totalorder %s32_s25, %s32_s25 }
   0x6   :  { %p707_p0 = scmp.ne.s32.totalorder %s32_s25, %s706_s26  ;;  %p712_p2 = scmp.lt.s32.totalorder %s706_s26, %s706_s26 }
   0x8   :  { %p713_p3 = por %p712_p2, %p711_p1 }
   0xa   :  { %p714_p4 = pnand %p713_p3, %p707_p0 }
   0xc   :  { %717 = shalt.err (!%p714_p4)
}
   0xd   :  { %s807_s27 = smov 128   ;;  %s808_s28 = smov 8  }
   0xe   :  { %37 = dma.hbm_to_vmem [thread:$0]  %s964_s1, 2048, %s32_s25, [#allocation6], %s807_s27, %s807_s27, %s808_s28  }
   0xf   :  { %s809_s8 = smov [#allocation2]   ;;  %s810_s10 = smov [#allocation7]  }
  0x10   :  { %s22_s9 = sshll.u32 %s809_s8, 4  ;;  %s45_s11 = sshll.u32 %s810_s10, 4  ;;  %s23_s9 = int_to_ptr.vmem [resolvable:$true] %s22_s9  ;;  %s46_s11 = int_to_ptr.vmem [resolvable:$true] %s45_s11 }
  0x11   :  { %s726_s12 = scalar_lea.vmem %s23_s9, 128  ;;  %p731_p6 = scmp.lt.s32.totalorder %s23_s9, %s23_s9 }
  0x12   :  { %p727_p5 = scmp.ne.s32.totalorder %s23_s9, %s726_s12  ;;  %p732_p7 = scmp.lt.s32.totalorder %s726_s12, %s726_s12 }
  0x14   :  { %p733_p8 = por %p732_p7, %p731_p6 }
  0x16   :  { %p734_p9 = pnand %p733_p8, %p727_p5 }
  0x18   :  { %737 = shalt.err (!%p734_p9)
}
  0x19   :  { %25 = dma.hbm_to_vmem [thread:$0]  %s963_s0, 128, %s23_s9, [#allocation3]  }
  0x1a   :  { %s746_s15 = scalar_lea.vmem %s46_s11, 4096  ;;  %p751_p11 = scmp.lt.s32.totalorder %s46_s11, %s46_s11 }
  0x1b   :  { %p747_p10 = scmp.ne.s32.totalorder %s46_s11, %s746_s15  ;;  %p752_p12 = scmp.lt.s32.totalorder %s746_s15, %s746_s15 }
  0x1d   :  { %p753_p13 = por %p752_p12, %p751_p11 }
  0x1f   :  { %p754_p0 = pnand %p753_p13, %p747_p10 }
  0x21   :  { %757 = shalt.err (!%p754_p0)
}
  0x22   :  { %51 = dma.hbm_to_vmem [thread:$0]  %s966_s3, 4096, %s46_s11, [#allocation6], %s807_s27, %s807_s27, %s808_s28  }
  0x23   :  { %s811_s17 = smov [#allocation8]  }
  0x24   :  { %s59_s18 = sshll.u32 %s811_s17, 4  ;;  %s60_s18 = int_to_ptr.vmem [resolvable:$true] %s59_s18 }
  0x25   :  { %s766_s19 = scalar_lea.vmem %s60_s18, 2048  ;;  %p771_p2 = scmp.lt.s32.totalorder %s60_s18, %s60_s18 }
  0x26   :  { %p767_p1 = scmp.ne.s32.totalorder %s60_s18, %s766_s19  ;;  %p772_p3 = scmp.lt.s32.totalorder %s766_s19, %s766_s19 }
  0x28   :  { %p773_p4 = por %p772_p3, %p771_p2 }
  0x2a   :  { %p774_p5 = pnand %p773_p4, %p767_p1 }
  0x2c   :  { %777 = shalt.err (!%p774_p5)
}
  0x2d   :  { %65 = dma.hbm_to_vmem [thread:$0]  %s968_s5, 2048, %s60_s18, [#allocation9], %s807_s27, %s807_s27, %s808_s28  }
  0x2e   :  { %798 = dma.done.wait [#allocation3], 128  }
  0x2f   :  { %799 = vsyncadd [#allocation3], 4294967168 }
  0x30   :  { %800 = dma.done.wait [#allocation6], 6144  }
  0x31   :  { %801 = vsyncadd [#allocation6], 4294961152 }
  0x32   :  { %802 = dma.done.wait [#allocation9], 2048  }
  0x33   :  { %803 = vsyncadd [#allocation9], 4294965248  ;;  %v812_v0 = vmov 0.0   ;;  %vm813_vm0 = vmmov 0   ;;  %v96_v1 = vld [vmem:[#allocation5 + $0x78] sm:$0xff]  ;;  %v95_v2 = vld [vmem:[#allocation5 + $0x70] sm:$0xff] }
  0x34   :  { %549 = vmatprep.subr.mxu0 %v812_v0  ;;  %581 = vmatprep.mubr.msk.f32.mxu0 %vm813_vm0, %v812_v0  ;;  %v94_v3 = vld [vmem:[#allocation5 + $0x68] sm:$0xff]  ;;  %v93_v4 = vld [vmem:[#allocation5 + $0x60] sm:$0xff]  ;;  %v190_v5 = vld [vmem:[#allocation7 + $0x78] sm:$0xff]  ;;  %s814_s26 = smov [#allocation10]  }
  0x35   :  { %584 = vmatprep.subr.mxu1 %v812_v0  ;;  %616 = vmatprep.mubr.msk.f32.mxu1 %vm813_vm0, %v812_v0  ;;  %v92_v6 = vld [vmem:[#allocation5 + $0x58] sm:$0xff]  ;;  %v189_v7 = vld [vmem:[#allocation7 + $0x70] sm:$0xff]  ;;  %v188_v8 = vld [vmem:[#allocation7 + $0x68] sm:$0xff]  ;;  %s465_s27 = sshll.u32 %s814_s26, 4  ;;  %s466_s27 = int_to_ptr.vmem [resolvable:$true] %s465_s27 }
  0x36   :  { %550 = vmatpush3.msra.mxu0 %v96_v1  ;;  %585 = vmatpush3.msra.mxu1 %v190_v5  ;;  %v91_v9 = vld [vmem:[#allocation5 + $0x50] sm:$0xff]  ;;  %v187_v10 = vld [vmem:[#allocation7 + $0x60] sm:$0xff]  ;;  %v90_v11 = vld [vmem:[#allocation5 + $0x48] sm:$0xff]  ;;  %s778_s28 = scalar_lea.vmem %s466_s27, 128  ;;  %p783_p7 = scmp.lt.s32.totalorder %s466_s27, %s466_s27 }
  0x37   :  { %551 = vmatprep.subr.mxu0 %v812_v0  ;;  %586 = vmatprep.subr.mxu1 %v812_v0  ;;  %v186_v12 = vld [vmem:[#allocation7 + $0x58] sm:$0xff]  ;;  %v89_v13 = vld [vmem:[#allocation5 + $0x40] sm:$0xff]  ;;  %v185_v14 = vld [vmem:[#allocation7 + $0x50] sm:$0xff]  ;;  %p779_p6 = scmp.ne.s32.totalorder %s466_s27, %s778_s28  ;;  %p784_p8 = scmp.lt.s32.totalorder %s778_s28, %s778_s28 }
  0x38   :  { %552 = vmatpush3.msra.mxu0 %v95_v2  ;;  %587 = vmatpush3.msra.mxu1 %v189_v7  ;;  %v88_v15 = vld [vmem:[#allocation5 + $0x38] sm:$0xff]  ;;  %v184_v16 = vld [vmem:[#allocation7 + $0x48] sm:$0xff]  ;;  %v87_v17 = vld [vmem:[#allocation5 + $0x30] sm:$0xff] }
  0x39   :  { %553 = vmatprep.subr.mxu0 %v812_v0  ;;  %588 = vmatprep.subr.mxu1 %v812_v0  ;;  %v183_v18 = vld [vmem:[#allocation7 + $0x40] sm:$0xff]  ;;  %v86_v19 = vld [vmem:[#allocation5 + $0x28] sm:$0xff]  ;;  %v182_v20 = vld [vmem:[#allocation7 + $0x38] sm:$0xff]  ;;  %p785_p9 = por %p784_p8, %p783_p7 }
  0x3a   :  { %554 = vmatpush3.msra.mxu0 %v94_v3  ;;  %589 = vmatpush3.msra.mxu1 %v188_v8  ;;  %v85_v21 = vld [vmem:[#allocation5 + $0x20] sm:$0xff]  ;;  %v181_v22 = vld [vmem:[#allocation7 + $0x30] sm:$0xff]  ;;  %v84_v23 = vld [vmem:[#allocation5 + $0x18] sm:$0xff] }
  0x3b   :  { %555 = vmatprep.subr.mxu0 %v812_v0  ;;  %590 = vmatprep.subr.mxu1 %v812_v0  ;;  %v180_v24 = vld [vmem:[#allocation7 + $0x28] sm:$0xff]  ;;  %v83_v25 = vld [vmem:[#allocation5 + $0x10] sm:$0xff]  ;;  %v179_v26 = vld [vmem:[#allocation7 + $0x20] sm:$0xff]  ;;  %p786_p10 = pnand %p785_p9, %p779_p6 }
  0x3c   :  { %556 = vmatpush3.msra.mxu0 %v93_v4  ;;  %591 = vmatpush3.msra.mxu1 %v187_v10  ;;  %v82_v27 = vld [vmem:[#allocation5 + $0x8] sm:$0xff]  ;;  %v178_v28 = vld [vmem:[#allocation7 + $0x18] sm:$0xff]  ;;  %v81_v29 = vld [vmem:[#allocation5] sm:$0xff] }
  0x3d   :  { %557 = vmatprep.subr.mxu0 %v812_v0  ;;  %592 = vmatprep.subr.mxu1 %v812_v0  ;;  %v80_v30 = vld [vmem:[#allocation2] sm:$0xff]  ;;  %v177_v31 = vld [vmem:[#allocation7 + $0x10] sm:$0xff]  ;;  %v176_v32 = vld [vmem:[#allocation7 + $0x8] sm:$0xff] }
  0x3e   :  { %558 = vmatpush3.msra.mxu0 %v92_v6  ;;  %593 = vmatpush3.msra.mxu1 %v186_v12  ;;  %v175_v33 = vld [vmem:[#allocation7] sm:$0xff]  ;;  %v285_v34 = vld [vmem:[#allocation7 + $0xf8] sm:$0xff]  ;;  %v284_v35 = vld [vmem:[#allocation7 + $0xf0] sm:$0xff] }
  0x3f   :  { %559 = vmatprep.subr.mxu0 %v812_v0  ;;  %594 = vmatprep.subr.mxu1 %v812_v0  ;;  %v283_v36 = vld [vmem:[#allocation7 + $0xe8] sm:$0xff]  ;;  %v282_v37 = vld [vmem:[#allocation7 + $0xe0] sm:$0xff]  ;;  %v281_v38 = vld [vmem:[#allocation7 + $0xd8] sm:$0xff] }
  0x40   :  { %560 = vmatpush3.msra.mxu0 %v91_v9  ;;  %595 = vmatpush3.msra.mxu1 %v185_v14  ;;  %v280_v39 = vld [vmem:[#allocation7 + $0xd0] sm:$0xff]  ;;  %v279_v40 = vld [vmem:[#allocation7 + $0xc8] sm:$0xff]  ;;  %v278_v41 = vld [vmem:[#allocation7 + $0xc0] sm:$0xff] }
  0x41   :  { %561 = vmatprep.subr.mxu0 %v812_v0  ;;  %596 = vmatprep.subr.mxu1 %v812_v0  ;;  %v277_v42 = vld [vmem:[#allocation7 + $0xb8] sm:$0xff]  ;;  %v276_v43 = vld [vmem:[#allocation7 + $0xb0] sm:$0xff]  ;;  %v275_v44 = vld [vmem:[#allocation7 + $0xa8] sm:$0xff] }
  0x42   :  { %562 = vmatpush3.msra.mxu0 %v90_v11  ;;  %597 = vmatpush3.msra.mxu1 %v184_v16  ;;  %v274_v45 = vld [vmem:[#allocation7 + $0xa0] sm:$0xff]  ;;  %v273_v46 = vld [vmem:[#allocation7 + $0x98] sm:$0xff]  ;;  %v272_v52 = vld [vmem:[#allocation7 + $0x90] sm:$0xff] }
  0x43   :  { %563 = vmatprep.subr.mxu0 %v812_v0  ;;  %598 = vmatprep.subr.mxu1 %v812_v0  ;;  %v476_v47 = vld [vmem:[%s965_s2] ss:$0 sm:$0xff]  ;;  %v271_v53 = vld [vmem:[#allocation7 + $0x88] sm:$0xff]  ;;  %v270_v54 = vld [vmem:[#allocation7 + $0x80] sm:$0xff] }
  0x44   :  { %564 = vmatpush3.msra.mxu0 %v89_v13  ;;  %599 = vmatpush3.msra.mxu1 %v183_v18  ;;  %v380_v55 = vld [vmem:[#allocation8 + $0x78] sm:$0xff]  ;;  %v379_v56 = vld [vmem:[#allocation8 + $0x70] sm:$0xff]  ;;  %v378_v57 = vld [vmem:[#allocation8 + $0x68] sm:$0xff] }
  0x45   :  { %565 = vmatprep.subr.mxu0 %v812_v0  ;;  %600 = vmatprep.subr.mxu1 %v812_v0  ;;  %v377_v58 = vld [vmem:[#allocation8 + $0x60] sm:$0xff]  ;;  %v376_v59 = vld [vmem:[#allocation8 + $0x58] sm:$0xff]  ;;  %v375_v60 = vld [vmem:[#allocation8 + $0x50] sm:$0xff] }
  0x46   :  { %566 = vmatpush3.msra.mxu0 %v88_v15  ;;  %601 = vmatpush3.msra.mxu1 %v182_v20  ;;  %v374_v61 = vld [vmem:[#allocation8 + $0x48] sm:$0xff]  ;;  %v373_v62 = vld [vmem:[#allocation8 + $0x40] sm:$0xff]  ;;  %v372_v63 = vld [vmem:[#allocation8 + $0x38] sm:$0xff] }
  0x47   :  { %567 = vmatprep.subr.mxu0 %v812_v0  ;;  %602 = vmatprep.subr.mxu1 %v812_v0  ;;  %v371_v1 = vld [vmem:[#allocation8 + $0x30] sm:$0xff]  ;;  %v370_v2 = vld [vmem:[#allocation8 + $0x28] sm:$0xff]  ;;  %v369_v3 = vld [vmem:[#allocation8 + $0x20] sm:$0xff] }
  0x48   :  { %568 = vmatpush3.msra.mxu0 %v87_v17  ;;  %603 = vmatpush3.msra.mxu1 %v181_v22  ;;  %v368_v4 = vld [vmem:[#allocation8 + $0x18] sm:$0xff]  ;;  %v367_v10 = vld [vmem:[#allocation8 + $0x10] sm:$0xff]  ;;  %v366_v11 = vld [vmem:[#allocation8 + $0x8] sm:$0xff] }
  0x49   :  { %569 = vmatprep.subr.mxu0 %v812_v0  ;;  %604 = vmatprep.subr.mxu1 %v812_v0  ;;  %v477_v5 = vld [vmem:[%s967_s4] ss:$0 sm:$0xff]  ;;  %v365_v12 = vld [vmem:[#allocation8] sm:$0xff]  ;;  %v479_v13 = vld [vmem:[%s967_s4 + $0x1] ss:$0 sm:$0xff] }
  0x4a   :  { %570 = vmatpush3.msra.mxu0 %v86_v19  ;;  %605 = vmatpush3.msra.mxu1 %v180_v24  ;;  %v480_v18 = vld [vmem:[%s969_s6] ss:$0 sm:$0xff] }
  0x4b   :  { %571 = vmatprep.subr.mxu0 %v812_v0  ;;  %606 = vmatprep.subr.mxu1 %v812_v0 }
  0x4c   :  { %572 = vmatpush3.msra.mxu0 %v85_v21  ;;  %607 = vmatpush3.msra.mxu1 %v179_v26 }
  0x4d   :  { %573 = vmatprep.subr.mxu0 %v812_v0  ;;  %608 = vmatprep.subr.mxu1 %v812_v0 }
  0x4e   :  { %574 = vmatpush3.msra.mxu0 %v84_v23  ;;  %609 = vmatpush3.msra.mxu1 %v178_v28 }
  0x4f   :  { %575 = vmatprep.subr.mxu0 %v812_v0  ;;  %610 = vmatprep.subr.mxu1 %v812_v0 }
  0x50   :  { %576 = vmatpush3.msra.mxu0 %v83_v25  ;;  %611 = vmatpush3.msra.mxu1 %v177_v31 }
  0x51   :  { %577 = vmatprep.subr.mxu0 %v812_v0  ;;  %612 = vmatprep.subr.mxu1 %v812_v0 }
  0x52   :  { %578 = vmatpush3.msra.mxu0 %v82_v27  ;;  %613 = vmatpush3.msra.mxu1 %v176_v32 }
  0x53   :  { %579 = vmatprep.subr.mxu0 %v812_v0  ;;  %614 = vmatprep.subr.mxu1 %v812_v0 }
  0x54   :  { %580 = vmatpush3.msra.mxu0 %v81_v29  ;;  %615 = vmatpush3.msra.mxu1 %v175_v33 }
  0x55   :  { %582 = vmatmul.mubr.f32.vlgmr.msra.gmra.mxu0 %v80_v30  ;;  %619 = vmatprep.subr.mxu0 %v812_v0 }
  0x56   :  { %651 = vmatprep.mubr.msk.f32.mxu0 %vm813_vm0, %v812_v0  ;;  %654 = vmatprep.subr.mxu1 %v812_v0 }
  0x57   :  { %620 = vmatpush3.msra.mxu0 %v285_v34 }
  0x58   :  { %621 = vmatprep.subr.mxu0 %v812_v0 }
  0x59   :  { %622 = vmatpush3.msra.mxu0 %v284_v35 }
  0x5a   :  { %623 = vmatprep.subr.mxu0 %v812_v0 }
  0x5b   :  { %624 = vmatpush3.msra.mxu0 %v283_v36 }
  0x5c   :  { %625 = vmatprep.subr.mxu0 %v812_v0 }
  0x5d   :  { %626 = vmatpush3.msra.mxu0 %v282_v37 }
  0x5e   :  { %627 = vmatprep.subr.mxu0 %v812_v0 }
  0x5f   :  { %628 = vmatpush3.msra.mxu0 %v281_v38 }
  0x60   :  { %629 = vmatprep.subr.mxu0 %v812_v0 }
  0x61   :  { %630 = vmatpush3.msra.mxu0 %v280_v39 }
  0x62   :  { %631 = vmatprep.subr.mxu0 %v812_v0 }
  0x63   :  { %632 = vmatpush3.msra.mxu0 %v279_v40 }
  0x64   :  { %633 = vmatprep.subr.mxu0 %v812_v0 }
  0x65   :  { %634 = vmatpush3.msra.mxu0 %v278_v41 }
  0x66   :  { %635 = vmatprep.subr.mxu0 %v812_v0 }
  0x67   :  { %636 = vmatpush3.msra.mxu0 %v277_v42 }
  0x68   :  { %637 = vmatprep.subr.mxu0 %v812_v0 }
  0x69   :  { %638 = vmatpush3.msra.mxu0 %v276_v43 }
  0x6a   :  { %639 = vmatprep.subr.mxu0 %v812_v0 }
  0x6b   :  { %640 = vmatpush3.msra.mxu0 %v275_v44 }
  0x6c   :  { %641 = vmatprep.subr.mxu0 %v812_v0 }
  0x6d   :  { %642 = vmatpush3.msra.mxu0 %v274_v45 }
  0x6e   :  { %643 = vmatprep.subr.mxu0 %v812_v0 }
  0x6f   :  { %644 = vmatpush3.msra.mxu0 %v273_v46 }
  0x70   :  { %645 = vmatprep.subr.mxu0 %v812_v0 }
  0x71   :  { %646 = vmatpush3.msra.mxu0 %v272_v52 }
  0x72   :  { %647 = vmatprep.subr.mxu0 %v812_v0 }
  0x73   :  { %648 = vmatpush3.msra.mxu0 %v271_v53 }
  0x74   :  { %649 = vmatprep.subr.mxu0 %v812_v0 }
  0x75   :  { %650 = vmatpush3.msra.mxu0 %v270_v54 }
 0x115   :  { %v170_v48 = vpop.f32.mrf.mxu0 }
 0x116   :  { %v171_v49 = vadd.f32 %v476_v47, %v170_v48 }
 0x117   :  { %v583_v50 = vpop.f32.mrf.mxu0 }
 0x118   :  { %v174_v51 = vmax.f32 %v171_v49, 0.0 }
 0x11a   :  { %617 = vmatmul.mubr.f32.vlgmr.msra.gmra.mxu1 %v174_v51 }
 0x11b   :  { %686 = vmatprep.mubr.msk.f32.mxu1 %vm813_vm0, %v812_v0  ;;  %655 = vmatpush3.msra.mxu1 %v380_v55 }
 0x11c   :  { %656 = vmatprep.subr.mxu1 %v812_v0 }
 0x11d   :  { %657 = vmatpush3.msra.mxu1 %v379_v56 }
 0x11e   :  { %658 = vmatprep.subr.mxu1 %v812_v0 }
 0x11f   :  { %659 = vmatpush3.msra.mxu1 %v378_v57 }
 0x120   :  { %660 = vmatprep.subr.mxu1 %v812_v0 }
 0x121   :  { %661 = vmatpush3.msra.mxu1 %v377_v58 }
 0x122   :  { %662 = vmatprep.subr.mxu1 %v812_v0 }
 0x123   :  { %663 = vmatpush3.msra.mxu1 %v376_v59 }
 0x124   :  { %664 = vmatprep.subr.mxu1 %v812_v0 }
 0x125   :  { %665 = vmatpush3.msra.mxu1 %v375_v60 }
 0x126   :  { %666 = vmatprep.subr.mxu1 %v812_v0 }
 0x127   :  { %667 = vmatpush3.msra.mxu1 %v374_v61 }
 0x128   :  { %668 = vmatprep.subr.mxu1 %v812_v0 }
 0x129   :  { %669 = vmatpush3.msra.mxu1 %v373_v62 }
 0x12a   :  { %670 = vmatprep.subr.mxu1 %v812_v0 }
 0x12b   :  { %671 = vmatpush3.msra.mxu1 %v372_v63 }
 0x12c   :  { %672 = vmatprep.subr.mxu1 %v812_v0 }
 0x12d   :  { %673 = vmatpush3.msra.mxu1 %v371_v1 }
 0x12e   :  { %674 = vmatprep.subr.mxu1 %v812_v0 }
 0x12f   :  { %675 = vmatpush3.msra.mxu1 %v370_v2 }
 0x130   :  { %676 = vmatprep.subr.mxu1 %v812_v0 }
 0x131   :  { %677 = vmatpush3.msra.mxu1 %v369_v3 }
 0x132   :  { %678 = vmatprep.subr.mxu1 %v812_v0 }
 0x133   :  { %679 = vmatpush3.msra.mxu1 %v368_v4 }
 0x134   :  { %680 = vmatprep.subr.mxu1 %v812_v0 }
 0x135   :  { %681 = vmatpush3.msra.mxu1 %v367_v10 }
 0x136   :  { %682 = vmatprep.subr.mxu1 %v812_v0 }
 0x137   :  { %683 = vmatpush3.msra.mxu1 %v366_v11 }
 0x138   :  { %684 = vmatprep.subr.mxu1 %v812_v0 }
 0x139   :  { %685 = vmatpush3.msra.mxu1 %v365_v12 }
 0x1da   :  { %v264_v6 = vpop.f32.mrf.mxu1 }
 0x1db   :  { %v265_v7 = vadd.f32 %v477_v5, %v264_v6 }
 0x1dc   :  { %v618_v8 = vpop.f32.mrf.mxu1 }
 0x1dd   :  { %v268_v9 = vmax.f32 %v265_v7, 0.0 }
 0x1df   :  { %652 = vmatmul.mubr.f32.vlgmr.msra.gmra.mxu0 %v268_v9 }
 0x29f   :  { %v360_v14 = vpop.f32.mrf.mxu0 }
 0x2a0   :  { %v361_v15 = vadd.f32 %v479_v13, %v360_v14 }
 0x2a1   :  { %v653_v16 = vpop.f32.mrf.mxu0 }
 0x2a2   :  { %v364_v17 = vmax.f32 %v361_v15, 0.0 }
 0x2a4   :  { %687 = vmatmul.mubr.f32.vlgmr.msra.gmra.mxu1 %v364_v17 }
 0x364   :  { %v454_v19 = vpop.f32.mrf.mxu1 }
 0x365   :  { %v455_v20 = vadd.f32 %v480_v18, %v454_v19 }
 0x366   :  { %v688_v0 = vpop.f32.mrf.mxu1 }
 0x367   :  { %458 = vst [vmem:[#allocation10] sm:$0xff] %v455_v20 }
 0x368   :  { %789 = shalt.err (!%p786_p10)
}
 0x369   :  { %468 = dma.vmem_to_hbm [thread:$0]  %s466_s27, 128, %s970_s7, [#allocation4]  }
 0x36a   :  { %804 = dma.done.wait [#allocation4], 128  }
 0x36b   :  { %805 = vsyncadd [#allocation4], 4294967168 }
 0x36c   :  { %472 = vsyncpa [#allocation3], 1 }
 0x36d   :  { %473 = vsyncpa [#allocation6], 1 }
 0x36e   :  { %474 = vsyncpa [#allocation9], 1 }
 0x36f   :  { %475 = vsyncpa [#allocation4], 1 }

// kernel: tpu_custom_call.1
= control target key start
LH: loop header
LB: loop body
LE: loop exit
PB: predicated region body
PF: predicated region fallthrough
CT: control target
= control target key end

     0   :  { %12 = vsyncpa [#allocation3], 0  ;;  %s963_s0 = inlined_call_operand.hbm [shape: f32[8,128], index: 0, kind: input, shape index: {}]   ;;  %s964_s1 = inlined_call_operand.hbm [shape: f32[128,128], index: 1, kind: input, shape index: {}]   ;;  %s965_s2 = inlined_call_operand.vmem [shape: f32[1,128], index: 2, kind: input, shape index: {}]   ;;  %s966_s3 = inlined_call_operand.hbm [shape: f32[2,128,128], index: 3, kind: input, shape index: {}]   ;;  %s967_s4 = inlined_call_operand.vmem [shape: f32[2,1,128], index: 4, kind: input, shape index: {}]   ;;  %s968_s5 = inlined_call_operand.hbm [shape: f32[128,128], index: 5, kind: input, shape index: {}]   ;;  %s969_s6 = inlined_call_operand.vmem [shape: f32[1,128], index: 6, kind: input, shape index: {}]   ;;  %s970_s7 = inlined_call_operand.hbm [shape: f32[8,128], index: 7, kind: output, shape index: {}]  }
   0x1   :  { %13 = vsyncpa [#allocation6], 0 }
   0x2   :  { %14 = vsyncpa [#allocation9], 0 }
   0x3   :  { %15 = vsyncpa [#allocation4], 0  ;;  %s806_s24 = smov [#allocation5]  }
   0x4   :  { %s31_s25 = sshll.u32 %s806_s24, 4  ;;  %s32_s25 = int_to_ptr.vmem [resolvable:$true] %s31_s25 }
   0x5   :  { %s706_s26 = scalar_lea.vmem %s32_s25, 2048  ;;  %p711_p1 = scmp.lt.s32.totalorder %s32_s25, %s32_s25 }
   0x6   :  { %p707_p0 = scmp.ne.s32.totalorder %s32_s25, %s706_s26  ;;  %p712_p2 = scmp.lt.s32.totalorder %s706_s26, %s706_s26 }
   0x8   :  { %p713_p3 = por %p712_p2, %p711_p1 }
   0xa   :  { %p714_p4 = pnand %p713_p3, %p707_p0 }
   0xc   :  { %717 = shalt.err (!%p714_p4)
}
   0xd   :  { %s807_s27 = smov 128   ;;  %s808_s28 = smov 8  }
   0xe   :  { %37 = dma.hbm_to_vmem [thread:$0]  %s964_s1, 2048, %s32_s25, [#allocation6], %s807_s27, %s807_s27, %s808_s28  }
   0xf   :  { %s809_s8 = smov [#allocation2]   ;;  %s810_s10 = smov [#allocation7]  }
  0x10   :  { %s22_s9 = sshll.u32 %s809_s8, 4  ;;  %s45_s11 = sshll.u32 %s810_s10, 4  ;;  %s23_s9 = int_to_ptr.vmem [resolvable:$true] %s22_s9  ;;  %s46_s11 = int_to_ptr.vmem [resolvable:$true] %s45_s11 }
  0x11   :  { %s726_s12 = scalar_lea.vmem %s23_s9, 128  ;;  %p731_p6 = scmp.lt.s32.totalorder %s23_s9, %s23_s9 }
  0x12   :  { %p727_p5 = scmp.ne.s32.totalorder %s23_s9, %s726_s12  ;;  %p732_p7 = scmp.lt.s32.totalorder %s726_s12, %s726_s12 }
  0x14   :  { %p733_p8 = por %p732_p7, %p731_p6 }
  0x16   :  { %p734_p9 = pnand %p733_p8, %p727_p5 }
  0x18   :  { %737 = shalt.err (!%p734_p9)
}
  0x19   :  { %25 = dma.hbm_to_vmem [thread:$0]  %s963_s0, 128, %s23_s9, [#allocation3]  }
  0x1a   :  { %s746_s15 = scalar_lea.vmem %s46_s11, 4096  ;;  %p751_p11 = scmp.lt.s32.totalorder %s46_s11, %s46_s11 }
  0x1b   :  { %p747_p10 = scmp.ne.s32.totalorder %s46_s11, %s746_s15  ;;  %p752_p12 = scmp.lt.s32.totalorder %s746_s15, %s746_s15 }
  0x1d   :  { %p753_p13 = por %p752_p12, %p751_p11 }
  0x1f   :  { %p754_p0 = pnand %p753_p13, %p747_p10 }
  0x21   :  { %757 = shalt.err (!%p754_p0)
}
  0x22   :  { %51 = dma.hbm_to_vmem [thread:$0]  %s966_s3, 4096, %s46_s11, [#allocation6], %s807_s27, %s807_s27, %s808_s28  }
  0x23   :  { %s811_s17 = smov [#allocation8]  }
  0x24   :  { %s59_s18 = sshll.u32 %s811_s17, 4  ;;  %s60_s18 = int_to_ptr.vmem [resolvable:$true] %s59_s18 }
  0x25   :  { %s766_s19 = scalar_lea.vmem %s60_s18, 2048  ;;  %p771_p2 = scmp.lt.s32.totalorder %s60_s18, %s60_s18 }
  0x26   :  { %p767_p1 = scmp.ne.s32.totalorder %s60_s18, %s766_s19  ;;  %p772_p3 = scmp.lt.s32.totalorder %s766_s19, %s766_s19 }
  0x28   :  { %p773_p4 = por %p772_p3, %p771_p2 }
  0x2a   :  { %p774_p5 = pnand %p773_p4, %p767_p1 }
  0x2c   :  { %777 = shalt.err (!%p774_p5)
}
  0x2d   :  { %65 = dma.hbm_to_vmem [thread:$0]  %s968_s5, 2048, %s60_s18, [#allocation9], %s807_s27, %s807_s27, %s808_s28  }
  0x2e   :  { %798 = dma.done.wait [#allocation3], 128  }
  0x2f   :  { %799 = vsyncadd [#allocation3], 4294967168 }
  0x30   :  { %800 = dma.done.wait [#allocation6], 6144  }
  0x31   :  { %801 = vsyncadd [#allocation6], 4294961152 }
  0x32   :  { %802 = dma.done.wait [#allocation9], 2048  }
  0x33   :  { %803 = vsyncadd [#allocation9], 4294965248  ;;  %v812_v0 = vmov 0.0   ;;  %vm813_vm0 = vmmov 0   ;;  %v96_v1 = vld [vmem:[#allocation5 + $0x78] sm:$0xff]  ;;  %v95_v2 = vld [vmem:[#allocation5 + $0x70] sm:$0xff] }
  0x34   :  { %549 = vmatprep.subr.mxu0 %v812_v0  ;;  %581 = vmatprep.mubr.msk.f32.mxu0 %vm813_vm0, %v812_v0  ;;  %v94_v3 = vld [vmem:[#allocation5 + $0x68] sm:$0xff]  ;;  %v93_v4 = vld [vmem:[#allocation5 + $0x60] sm:$0xff]  ;;  %v190_v5 = vld [vmem:[#allocation7 + $0x78] sm:$0xff]  ;;  %s814_s26 = smov [#allocation10]  }
  0x35   :  { %584 = vmatprep.subr.mxu1 %v812_v0  ;;  %616 = vmatprep.mubr.msk.f32.mxu1 %vm813_vm0, %v812_v0  ;;  %v92_v6 = vld [vmem:[#allocation5 + $0x58] sm:$0xff]  ;;  %v189_v7 = vld [vmem:[#allocation7 + $0x70] sm:$0xff]  ;;  %v188_v8 = vld [vmem:[#allocation7 + $0x68] sm:$0xff]  ;;  %s465_s27 = sshll.u32 %s814_s26, 4  ;;  %s466_s27 = int_to_ptr.vmem [resolvable:$true] %s465_s27 }
  0x36   :  { %550 = vmatpush3.msra.mxu0 %v96_v1  ;;  %585 = vmatpush3.msra.mxu1 %v190_v5  ;;  %v91_v9 = vld [vmem:[#allocation5 + $0x50] sm:$0xff]  ;;  %v187_v10 = vld [vmem:[#allocation7 + $0x60] sm:$0xff]  ;;  %v90_v11 = vld [vmem:[#allocation5 + $0x48] sm:$0xff]  ;;  %s778_s28 = scalar_lea.vmem %s466_s27, 128  ;;  %p783_p7 = scmp.lt.s32.totalorder %s466_s27, %s466_s27 }
  0x37   :  { %551 = vmatprep.subr.mxu0 %v812_v0  ;;  %586 = vmatprep.subr.mxu1 %v812_v0  ;;  %v186_v12 = vld [vmem:[#allocation7 + $0x58] sm:$0xff]  ;;  %v89_v13 = vld [vmem:[#allocation5 + $0x40] sm:$0xff]  ;;  %v185_v14 = vld [vmem:[#allocation7 + $0x50] sm:$0xff]  ;;  %p779_p6 = scmp.ne.s32.totalorder %s466_s27, %s778_s28  ;;  %p784_p8 = scmp.lt.s32.totalorder %s778_s28, %s778_s28 }
  0x38   :  { %552 = vmatpush3.msra.mxu0 %v95_v2  ;;  %587 = vmatpush3.msra.mxu1 %v189_v7  ;;  %v88_v15 = vld [vmem:[#allocation5 + $0x38] sm:$0xff]  ;;  %v184_v16 = vld [vmem:[#allocation7 + $0x48] sm:$0xff]  ;;  %v87_v17 = vld [vmem:[#allocation5 + $0x30] sm:$0xff] }
  0x39   :  { %553 = vmatprep.subr.mxu0 %v812_v0  ;;  %588 = vmatprep.subr.mxu1 %v812_v0  ;;  %v183_v18 = vld [vmem:[#allocation7 + $0x40] sm:$0xff]  ;;  %v86_v19 = vld [vmem:[#allocation5 + $0x28] sm:$0xff]  ;;  %v182_v20 = vld [vmem:[#allocation7 + $0x38] sm:$0xff]  ;;  %p785_p9 = por %p784_p8, %p783_p7 }
  0x3a   :  { %554 = vmatpush3.msra.mxu0 %v94_v3  ;;  %589 = vmatpush3.msra.mxu1 %v188_v8  ;;  %v85_v21 = vld [vmem:[#allocation5 + $0x20] sm:$0xff]  ;;  %v181_v22 = vld [vmem:[#allocation7 + $0x30] sm:$0xff]  ;;  %v84_v23 = vld [vmem:[#allocation5 + $0x18] sm:$0xff] }
  0x3b   :  { %555 = vmatprep.subr.mxu0 %v812_v0  ;;  %590 = vmatprep.subr.mxu1 %v812_v0  ;;  %v180_v24 = vld [vmem:[#allocation7 + $0x28] sm:$0xff]  ;;  %v83_v25 = vld [vmem:[#allocation5 + $0x10] sm:$0xff]  ;;  %v179_v26 = vld [vmem:[#allocation7 + $0x20] sm:$0xff]  ;;  %p786_p10 = pnand %p785_p9, %p779_p6 }
  0x3c   :  { %556 = vmatpush3.msra.mxu0 %v93_v4  ;;  %591 = vmatpush3.msra.mxu1 %v187_v10  ;;  %v82_v27 = vld [vmem:[#allocation5 + $0x8] sm:$0xff]  ;;  %v178_v28 = vld [vmem:[#allocation7 + $0x18] sm:$0xff]  ;;  %v81_v29 = vld [vmem:[#allocation5] sm:$0xff] }
  0x3d   :  { %557 = vmatprep.subr.mxu0 %v812_v0  ;;  %592 = vmatprep.subr.mxu1 %v812_v0  ;;  %v80_v30 = vld [vmem:[#allocation2] sm:$0xff]  ;;  %v177_v31 = vld [vmem:[#allocation7 + $0x10] sm:$0xff]  ;;  %v176_v32 = vld [vmem:[#allocation7 + $0x8] sm:$0xff] }
  0x3e   :  { %558 = vmatpush3.msra.mxu0 %v92_v6  ;;  %593 = vmatpush3.msra.mxu1 %v186_v12  ;;  %v175_v33 = vld [vmem:[#allocation7] sm:$0xff]  ;;  %v285_v34 = vld [vmem:[#allocation7 + $0xf8] sm:$0xff]  ;;  %v284_v35 = vld [vmem:[#allocation7 + $0xf0] sm:$0xff] }
  0x3f   :  { %559 = vmatprep.subr.mxu0 %v812_v0  ;;  %594 = vmatprep.subr.mxu1 %v812_v0  ;;  %v283_v36 = vld [vmem:[#allocation7 + $0xe8] sm:$0xff]  ;;  %v282_v37 = vld [vmem:[#allocation7 + $0xe0] sm:$0xff]  ;;  %v281_v38 = vld [vmem:[#allocation7 + $0xd8] sm:$0xff] }
  0x40   :  { %560 = vmatpush3.msra.mxu0 %v91_v9  ;;  %595 = vmatpush3.msra.mxu1 %v185_v14  ;;  %v280_v39 = vld [vmem:[#allocation7 + $0xd0] sm:$0xff]  ;;  %v279_v40 = vld [vmem:[#allocation7 + $0xc8] sm:$0xff]  ;;  %v278_v41 = vld [vmem:[#allocation7 + $0xc0] sm:$0xff] }
  0x41   :  { %561 = vmatprep.subr.mxu0 %v812_v0  ;;  %596 = vmatprep.subr.mxu1 %v812_v0  ;;  %v277_v42 = vld [vmem:[#allocation7 + $0xb8] sm:$0xff]  ;;  %v276_v43 = vld [vmem:[#allocation7 + $0xb0] sm:$0xff]  ;;  %v275_v44 = vld [vmem:[#allocation7 + $0xa8] sm:$0xff] }
  0x42   :  { %562 = vmatpush3.msra.mxu0 %v90_v11  ;;  %597 = vmatpush3.msra.mxu1 %v184_v16  ;;  %v274_v45 = vld [vmem:[#allocation7 + $0xa0] sm:$0xff]  ;;  %v273_v46 = vld [vmem:[#allocation7 + $0x98] sm:$0xff]  ;;  %v272_v52 = vld [vmem:[#allocation7 + $0x90] sm:$0xff] }
  0x43   :  { %563 = vmatprep.subr.mxu0 %v812_v0  ;;  %598 = vmatprep.subr.mxu1 %v812_v0  ;;  %v476_v47 = vld [vmem:[%s965_s2] ss:$0 sm:$0xff]  ;;  %v271_v53 = vld [vmem:[#allocation7 + $0x88] sm:$0xff]  ;;  %v270_v54 = vld [vmem:[#allocation7 + $0x80] sm:$0xff] }
  0x44   :  { %564 = vmatpush3.msra.mxu0 %v89_v13  ;;  %599 = vmatpush3.msra.mxu1 %v183_v18  ;;  %v380_v55 = vld [vmem:[#allocation8 + $0x78] sm:$0xff]  ;;  %v379_v56 = vld [vmem:[#allocation8 + $0x70] sm:$0xff]  ;;  %v378_v57 = vld [vmem:[#allocation8 + $0x68] sm:$0xff] }
  0x45   :  { %565 = vmatprep.subr.mxu0 %v812_v0  ;;  %600 = vmatprep.subr.mxu1 %v812_v0  ;;  %v377_v58 = vld [vmem:[#allocation8 + $0x60] sm:$0xff]  ;;  %v376_v59 = vld [vmem:[#allocation8 + $0x58] sm:$0xff]  ;;  %v375_v60 = vld [vmem:[#allocation8 + $0x50] sm:$0xff] }
  0x46   :  { %566 = vmatpush3.msra.mxu0 %v88_v15  ;;  %601 = vmatpush3.msra.mxu1 %v182_v20  ;;  %v374_v61 = vld [vmem:[#allocation8 + $0x48] sm:$0xff]  ;;  %v373_v62 = vld [vmem:[#allocation8 + $0x40] sm:$0xff]  ;;  %v372_v63 = vld [vmem:[#allocation8 + $0x38] sm:$0xff] }
  0x47   :  { %567 = vmatprep.subr.mxu0 %v812_v0  ;;  %602 = vmatprep.subr.mxu1 %v812_v0  ;;  %v371_v1 = vld [vmem:[#allocation8 + $0x30] sm:$0xff]  ;;  %v370_v2 = vld [vmem:[#allocation8 + $0x28] sm:$0xff]  ;;  %v369_v3 = vld [vmem:[#allocation8 + $0x20] sm:$0xff] }
  0x48   :  { %568 = vmatpush3.msra.mxu0 %v87_v17  ;;  %603 = vmatpush3.msra.mxu1 %v181_v22  ;;  %v368_v4 = vld [vmem:[#allocation8 + $0x18] sm:$0xff]  ;;  %v367_v10 = vld [vmem:[#allocation8 + $0x10] sm:$0xff]  ;;  %v366_v11 = vld [vmem:[#allocation8 + $0x8] sm:$0xff] }
  0x49   :  { %569 = vmatprep.subr.mxu0 %v812_v0  ;;  %604 = vmatprep.subr.mxu1 %v812_v0  ;;  %v477_v5 = vld [vmem:[%s967_s4] ss:$0 sm:$0xff]  ;;  %v365_v12 = vld [vmem:[#allocation8] sm:$0xff]  ;;  %v479_v13 = vld [vmem:[%s967_s4 + $0x1] ss:$0 sm:$0xff] }
  0x4a   :  { %570 = vmatpush3.msra.mxu0 %v86_v19  ;;  %605 = vmatpush3.msra.mxu1 %v180_v24  ;;  %v480_v18 = vld [vmem:[%s969_s6] ss:$0 sm:$0xff] }
  0x4b   :  { %571 = vmatprep.subr.mxu0 %v812_v0  ;;  %606 = vmatprep.subr.mxu1 %v812_v0 }
  0x4c   :  { %572 = vmatpush3.msra.mxu0 %v85_v21  ;;  %607 = vmatpush3.msra.mxu1 %v179_v26 }
  0x4d   :  { %573 = vmatprep.subr.mxu0 %v812_v0  ;;  %608 = vmatprep.subr.mxu1 %v812_v0 }
  0x4e   :  { %574 = vmatpush3.msra.mxu0 %v84_v23  ;;  %609 = vmatpush3.msra.mxu1 %v178_v28 }
  0x4f   :  { %575 = vmatprep.subr.mxu0 %v812_v0  ;;  %610 = vmatprep.subr.mxu1 %v812_v0 }
  0x50   :  { %576 = vmatpush3.msra.mxu0 %v83_v25  ;;  %611 = vmatpush3.msra.mxu1 %v177_v31 }
  0x51   :  { %577 = vmatprep.subr.mxu0 %v812_v0  ;;  %612 = vmatprep.subr.mxu1 %v812_v0 }
  0x52   :  { %578 = vmatpush3.msra.mxu0 %v82_v27  ;;  %613 = vmatpush3.msra.mxu1 %v176_v32 }
  0x53   :  { %579 = vmatprep.subr.mxu0 %v812_v0  ;;  %614 = vmatprep.subr.mxu1 %v812_v0 }
  0x54   :  { %580 = vmatpush3.msra.mxu0 %v81_v29  ;;  %615 = vmatpush3.msra.mxu1 %v175_v33 }
  0x55   :  { %582 = vmatmul.mubr.f32.vlgmr.msra.gmra.mxu0 %v80_v30  ;;  %619 = vmatprep.subr.mxu0 %v812_v0 }
  0x56   :  { %651 = vmatprep.mubr.msk.f32.mxu0 %vm813_vm0, %v812_v0  ;;  %654 = vmatprep.subr.mxu1 %v812_v0 }
  0x57   :  { %620 = vmatpush3.msra.mxu0 %v285_v34 }
  0x58   :  { %621 = vmatprep.subr.mxu0 %v812_v0 }
  0x59   :  { %622 = vmatpush3.msra.mxu0 %v284_v35 }
  0x5a   :  { %623 = vmatprep.subr.mxu0 %v812_v0 }
  0x5b   :  { %624 = vmatpush3.msra.mxu0 %v283_v36 }
  0x5c   :  { %625 = vmatprep.subr.mxu0 %v812_v0 }
  0x5d   :  { %626 = vmatpush3.msra.mxu0 %v282_v37 }
  0x5e   :  { %627 = vmatprep.subr.mxu0 %v812_v0 }
  0x5f   :  { %628 = vmatpush3.msra.mxu0 %v281_v38 }
  0x60   :  { %629 = vmatprep.subr.mxu0 %v812_v0 }
  0x61   :  { %630 = vmatpush3.msra.mxu0 %v280_v39 }
  0x62   :  { %631 = vmatprep.subr.mxu0 %v812_v0 }
  0x63   :  { %632 = vmatpush3.msra.mxu0 %v279_v40 }
  0x64   :  { %633 = vmatprep.subr.mxu0 %v812_v0 }
  0x65   :  { %634 = vmatpush3.msra.mxu0 %v278_v41 }
  0x66   :  { %635 = vmatprep.subr.mxu0 %v812_v0 }
  0x67   :  { %636 = vmatpush3.msra.mxu0 %v277_v42 }
  0x68   :  { %637 = vmatprep.subr.mxu0 %v812_v0 }
  0x69   :  { %638 = vmatpush3.msra.mxu0 %v276_v43 }
  0x6a   :  { %639 = vmatprep.subr.mxu0 %v812_v0 }
  0x6b   :  { %640 = vmatpush3.msra.mxu0 %v275_v44 }
  0x6c   :  { %641 = vmatprep.subr.mxu0 %v812_v0 }
  0x6d   :  { %642 = vmatpush3.msra.mxu0 %v274_v45 }
  0x6e   :  { %643 = vmatprep.subr.mxu0 %v812_v0 }
  0x6f   :  { %644 = vmatpush3.msra.mxu0 %v273_v46 }
  0x70   :  { %645 = vmatprep.subr.mxu0 %v812_v0 }
  0x71   :  { %646 = vmatpush3.msra.mxu0 %v272_v52 }
  0x72   :  { %647 = vmatprep.subr.mxu0 %v812_v0 }
  0x73   :  { %648 = vmatpush3.msra.mxu0 %v271_v53 }
  0x74   :  { %649 = vmatprep.subr.mxu0 %v812_v0 }
  0x75   :  { %650 = vmatpush3.msra.mxu0 %v270_v54 }
 0x115   :  { %v170_v48 = vpop.f32.mrf.mxu0 }
 0x116   :  { %v171_v49 = vadd.f32 %v476_v47, %v170_v48 }
 0x117   :  { %v583_v50 = vpop.f32.mrf.mxu0 }
 0x118   :  { %v174_v51 = vmax.f32 %v171_v49, 0.0 }
 0x11a   :  { %617 = vmatmul.mubr.f32.vlgmr.msra.gmra.mxu1 %v174_v51 }
 0x11b   :  { %686 = vmatprep.mubr.msk.f32.mxu1 %vm813_vm0, %v812_v0  ;;  %655 = vmatpush3.msra.mxu1 %v380_v55 }
 0x11c   :  { %656 = vmatprep.subr.mxu1 %v812_v0 }
 0x11d   :  { %657 = vmatpush3.msra.mxu1 %v379_v56 }
 0x11e   :  { %658 = vmatprep.subr.mxu1 %v812_v0 }
 0x11f   :  { %659 = vmatpush3.msra.mxu1 %v378_v57 }
 0x120   :  { %660 = vmatprep.subr.mxu1 %v812_v0 }
 0x121   :  { %661 = vmatpush3.msra.mxu1 %v377_v58 }
 0x122   :  { %662 = vmatprep.subr.mxu1 %v812_v0 }
 0x123   :  { %663 = vmatpush3.msra.mxu1 %v376_v59 }
 0x124   :  { %664 = vmatprep.subr.mxu1 %v812_v0 }
 0x125   :  { %665 = vmatpush3.msra.mxu1 %v375_v60 }
 0x126   :  { %666 = vmatprep.subr.mxu1 %v812_v0 }
 0x127   :  { %667 = vmatpush3.msra.mxu1 %v374_v61 }
 0x128   :  { %668 = vmatprep.subr.mxu1 %v812_v0 }
 0x129   :  { %669 = vmatpush3.msra.mxu1 %v373_v62 }
 0x12a   :  { %670 = vmatprep.subr.mxu1 %v812_v0 }
 0x12b   :  { %671 = vmatpush3.msra.mxu1 %v372_v63 }
 0x12c   :  { %672 = vmatprep.subr.mxu1 %v812_v0 }
 0x12d   :  { %673 = vmatpush3.msra.mxu1 %v371_v1 }
 0x12e   :  { %674 = vmatprep.subr.mxu1 %v812_v0 }
 0x12f   :  { %675 = vmatpush3.msra.mxu1 %v370_v2 }
 0x130   :  { %676 = vmatprep.subr.mxu1 %v812_v0 }
 0x131   :  { %677 = vmatpush3.msra.mxu1 %v369_v3 }
 0x132   :  { %678 = vmatprep.subr.mxu1 %v812_v0 }
 0x133   :  { %679 = vmatpush3.msra.mxu1 %v368_v4 }
 0x134   :  { %680 = vmatprep.subr.mxu1 %v812_v0 }
 0x135   :  { %681 = vmatpush3.msra.mxu1 %v367_v10 }
 0x136   :  { %682 = vmatprep.subr.mxu1 %v812_v0 }
 0x137   :  { %683 = vmatpush3.msra.mxu1 %v366_v11 }
 0x138   :  { %684 = vmatprep.subr.mxu1 %v812_v0 }
 0x139   :  { %685 = vmatpush3.msra.mxu1 %v365_v12 }
 0x1da   :  { %v264_v6 = vpop.f32.mrf.mxu1 }
 0x1db   :  { %v265_v7 = vadd.f32 %v477_v5, %v264_v6 }
 0x1dc   :  { %v618_v8 = vpop.f32.mrf.mxu1 }
 0x1dd   :  { %v268_v9 = vmax.f32 %v265_v7, 0.0 }
 0x1df   :  { %652 = vmatmul.mubr.f32.vlgmr.msra.gmra.mxu0 %v268_v9 }
 0x29f   :  { %v360_v14 = vpop.f32.mrf.mxu0 }
 0x2a0   :  { %v361_v15 = vadd.f32 %v479_v13, %v360_v14 }
 0x2a1   :  { %v653_v16 = vpop.f32.mrf.mxu0 }
 0x2a2   :  { %v364_v17 = vmax.f32 %v361_v15, 0.0 }
 0x2a4   :  { %687 = vmatmul.mubr.f32.vlgmr.msra.gmra.mxu1 %v364_v17 }
 0x364   :  { %v454_v19 = vpop.f32.mrf.mxu1 }
 0x365   :  { %v455_v20 = vadd.f32 %v480_v18, %v454_v19 }
 0x366   :  { %v688_v0 = vpop.f32.mrf.mxu1 }
 0x367   :  { %458 = vst [vmem:[#allocation10] sm:$0xff] %v455_v20 }
 0x368   :  { %789 = shalt.err (!%p786_p10)
}
 0x369   :  { %468 = dma.vmem_to_hbm [thread:$0]  %s466_s27, 128, %s970_s7, [#allocation4]  }
 0x36a   :  { %804 = dma.done.wait [#allocation4], 128  }
 0x36b   :  { %805 = vsyncadd [#allocation4], 4294967168 }
 0x36c   :  { %472 = vsyncpa [#allocation3], 1 }
 0x36d   :  { %473 = vsyncpa [#allocation6], 1 }
 0x36e   :  { %474 = vsyncpa [#allocation9], 1 }
 0x36f   :  { %475 = vsyncpa [#allocation4], 1 }

</bundles_post_ra>
